<compile_context>
chip_gen: v7x
topology: tpu7x:2x2x1
jax: 0.10.0
libtpu: 0.0.40
codegen_flags: <defaults>
</compile_context>

<pallas_src>
import functools

import jax
import jax.numpy as jnp
from jax.experimental import pallas as pl
from jax.experimental.pallas import tpu as pltpu


def _combiner_kernel(x0_ref, x1_ref,
                     w1t_ref, b1_ref,
                     w2t_ref, b2_ref,
                     w3_ref, b3_ref,
                     o_ref, *, matmul_dtype):
    """Feature-major layout: features on sublanes, batch on lanes."""
    x0 = x0_ref[...]                                   # (1, TM)  gnn_score
    x1 = x1_ref[...]                                   # (1, TM)  timeProb

    # ---- fc1 (K=2) + folded BN1 + relu : two VPU broadcast FMAs ------------
    h1 = (w1t_ref[:, 0:1] * x0 +                       # (64,1)*(1,TM)
          w1t_ref[:, 1:2] * x1 +
          b1_ref[...])                                 # (64, TM)
    h1 = jnp.maximum(h1, 0.0)

    # ---- fc2 (64->32) + folded BN2 + relu : MXU, lane-dense output ---------
    h2 = jnp.dot(w2t_ref[...].astype(matmul_dtype),    # (32, 64)
                 h1.astype(matmul_dtype),              # (64, TM)
                 preferred_element_type=jnp.float32)   # (32, TM)
    h2 = jnp.maximum(h2 + b2_ref[...], 0.0)

    # ---- fc3 (32->1) : VPU multiply + sublane reduction --------------------
    y = jnp.sum(h2 * w3_ref[...], axis=0, keepdims=True) + b3_ref[...]
    o_ref[...] = y                                     # (1, TM) dense store


def time_gnn_combiner(gnn_score, time_prob, params, *,
                      tm=1024, matmul_dtype=jnp.bfloat16):
    """gnn_score, time_prob: (N,) float32. Returns (N, 1) float32."""
    (w1, b1, g1, be1, rm1, rv1,
     w2, b2, g2, be2, rm2, rv2,
     w3, b3) = params
    eps = 1e-5

    # --- fold BatchNorm (running stats, eval mode) into the Linear layers ---
    s1 = g1 / jnp.sqrt(rv1 + eps)                      # (64,)
    w1_eff = w1 * s1[None, :]                          # (2, 64)
    b1_eff = (b1 - rm1) * s1 + be1                     # (64,)
    s2 = g2 / jnp.sqrt(rv2 + eps)                      # (32,)
    w2_eff = w2 * s2[None, :]                          # (64, 32)
    b2_eff = (b2 - rm2) * s2 + be2                     # (32,)

    # --- transposed (feature-major) weights ---------------------------------
    w1t = jnp.asarray(w1_eff.T, jnp.float32)           # (64, 2)
    b1t = jnp.asarray(b1_eff.reshape(64, 1), jnp.float32)
    w2t = jnp.asarray(w2_eff.T, jnp.float32)           # (32, 64)
    b2t = jnp.asarray(b2_eff.reshape(32, 1), jnp.float32)
    w3c = jnp.asarray(w3.reshape(32, 1), jnp.float32)
    b3c = jnp.asarray(b3.reshape(1, 1), jnp.float32)

    # --- lane-dense inputs, padded to a multiple of the batch tile ----------
    n = gnn_score.shape[0]
    n_tiles = pl.cdiv(n, tm)
    n_pad = n_tiles * tm
    pad = n_pad - n
    x0 = jnp.pad(gnn_score.astype(jnp.float32), (0, pad)).reshape(1, n_pad)
    x1 = jnp.pad(time_prob.astype(jnp.float32), (0, pad)).reshape(1, n_pad)

    rep = lambda shape: pl.BlockSpec(shape, lambda i: (0, 0))   # replicated
    grid_spec = pltpu.PrefetchScalarGridSpec(
        num_scalar_prefetch=0,
        grid=(n_tiles,),
        in_specs=[
            pl.BlockSpec((1, tm), lambda i: (0, i)),   # gnn_score tile
            pl.BlockSpec((1, tm), lambda i: (0, i)),   # timeProb tile
            rep((64, 2)), rep((64, 1)),                # fc1+bn1 (folded)
            rep((32, 64)), rep((32, 1)),               # fc2+bn2 (folded)
            rep((32, 1)), rep((1, 1)),                 # fc3
        ],
        out_specs=pl.BlockSpec((1, tm), lambda i: (0, i)),
    )

    out = pl.pallas_call(
        functools.partial(_combiner_kernel, matmul_dtype=matmul_dtype),
        out_shape=jax.ShapeDtypeStruct((1, n_pad), jnp.float32),
        grid_spec=grid_spec,
        compiler_params=pltpu.CompilerParams(
            dimension_semantics=("parallel",)),
    )(x0, x1, w1t, b1t, w2t, b2t, w3c, b3c)

    # padded garbage columns are sliced off here
    return out.reshape(n_pad)[:n].reshape(n, 1)


def init_params(key):
    """Params matching PyTorch Linear/BatchNorm1d shapes ((in, out) layout)."""
    def linear(key, fan_in, fan_out):
        kw, kb = jax.random.split(key)
        bound = 1.0 / jnp.sqrt(fan_in)
        w = jax.random.uniform(kw, (fan_in, fan_out), jnp.float32, -bound, bound)
        b = jax.random.uniform(kb, (fan_out,), jnp.float32, -bound, bound)
        return w, b

    def bn(key, c):  # non-trivial running stats so the BN fold is exercised
        k1, k2, k3, k4 = jax.random.split(key, 4)
        gamma = jax.random.uniform(k1, (c,), jnp.float32, 0.8, 1.2)
        beta = 0.1 * jax.random.normal(k2, (c,), jnp.float32)
        rm = 0.1 * jax.random.normal(k3, (c,), jnp.float32)
        rv = jax.random.uniform(k4, (c,), jnp.float32, 0.5, 1.5)
        return gamma, beta, rm, rv

    k1, k2, k3, k4, k5 = jax.random.split(key, 5)
    w1, b1 = linear(k1, 2, 64)
    w2, b2 = linear(k2, 64, 32)
    w3, b3 = linear(k3, 32, 1)
    g1, be1, rm1, rv1 = bn(k4, 64)
    g2, be2, rm2, rv2 = bn(k5, 32)
    return (w1, b1, g1, be1, rm1, rv1,
            w2, b2, g2, be2, rm2, rv2,
            w3, b3)


def reference(gnn_score, time_prob, params):
    """Pure-JAX reference with the original (batch-major, unfused) math."""
    (w1, b1, g1, be1, rm1, rv1,
     w2, b2, g2, be2, rm2, rv2,
     w3, b3) = params
    eps = 1e-5
    x = jnp.stack([gnn_score, time_prob], axis=1)            # (N, 2)
    h = x @ w1 + b1
    h = jnp.maximum((h - rm1) / jnp.sqrt(rv1 + eps) * g1 + be1, 0.0)
    h = h @ w2 + b2
    h = jnp.maximum((h - rm2) / jnp.sqrt(rv2 + eps) * g2 + be2, 0.0)
    return h @ w3 + b3                                       # (N, 1)


if __name__ == "__main__":
    key = jax.random.PRNGKey(0)
    kp, ka, kb = jax.random.split(key, 3)

    N = 300  # deliberately NOT a multiple of the tile -> exercises padding
    gnn_score = jax.random.uniform(ka, (N,), jnp.float32)
    time_prob = jax.random.uniform(kb, (N,), jnp.float32)
    params = init_params(kp)

    ref = reference(gnn_score, time_prob, params)

    # Strict check: f32 matmul path.
    out_f32 = time_gnn_combiner(gnn_score, time_prob, params,
                                tm=256, matmul_dtype=jnp.float32)
    out_f32 = jax.block_until_ready(out_f32)
    assert out_f32.shape == (N, 1)
    assert jnp.allclose(out_f32, ref, rtol=1e-4, atol=1e-5), \
        "f32 kernel mismatch vs reference"

    # Performance path: bf16 MXU for fc2 (elementwise stays f32).
    out_bf16 = time_gnn_combiner(gnn_score, time_prob, params,
                                 tm=256, matmul_dtype=jnp.bfloat16)
    out_bf16 = jax.block_until_ready(out_bf16)
    assert jnp.allclose(out_bf16, ref, rtol=5e-2, atol=5e-3), \
        "bf16 kernel mismatch vs reference"

    print("KERNEL_OK")
</pallas_src>

<mosaic_0001>
module attributes {stable_mosaic.version = 11 : i64} {
  func.func @_combiner_kernel(%arg0: i32, %arg1: memref<1x256xf32, #tpu.memory_space<vmem>>, %arg2: memref<1x256xf32, #tpu.memory_space<vmem>>, %arg3: memref<64x2xf32, #tpu.memory_space<vmem>>, %arg4: memref<64x1xf32, #tpu.memory_space<vmem>>, %arg5: memref<32x64xf32, #tpu.memory_space<vmem>>, %arg6: memref<32x1xf32, #tpu.memory_space<vmem>>, %arg7: memref<32x1xf32, #tpu.memory_space<vmem>>, %arg8: memref<1x1xf32, #tpu.memory_space<vmem>>, %arg9: memref<1x256xf32, #tpu.memory_space<vmem>>) attributes {dimension_semantics = [#tpu.dimension_semantics<parallel>], iteration_bounds = array<i64: 2>, scalar_prefetch = 0 : i64, scratch_operands = 0 : i64, tpu.core_type = #tpu.core_type<tc>, window_params = [{transform_indices = @transform_0, window_bounds = array<i64: 1, 256>}, {transform_indices = @transform_1, window_bounds = array<i64: 1, 256>}, {pipeline_mode = #tpu.pipeline_mode<synchronous>, transform_indices = @transform_2, window_bounds = array<i64: 64, 2>}, {pipeline_mode = #tpu.pipeline_mode<synchronous>, transform_indices = @transform_3, window_bounds = array<i64: 64, 1>}, {pipeline_mode = #tpu.pipeline_mode<synchronous>, transform_indices = @transform_4, window_bounds = array<i64: 32, 64>}, {pipeline_mode = #tpu.pipeline_mode<synchronous>, transform_indices = @transform_5, window_bounds = array<i64: 32, 1>}, {pipeline_mode = #tpu.pipeline_mode<synchronous>, transform_indices = @transform_6, window_bounds = array<i64: 32, 1>}, {pipeline_mode = #tpu.pipeline_mode<synchronous>, transform_indices = @transform_7, window_bounds = array<i64: 1, 1>}, {transform_indices = @transform_8, window_bounds = array<i64: 1, 256>}]} {
    %c0 = arith.constant 0 : index
    %c0_0 = arith.constant 0 : index
    %0 = vector.load %arg1[%c0, %c0_0] : memref<1x256xf32, #tpu.memory_space<vmem>>, vector<1x256xf32>
    %c0_1 = arith.constant 0 : index
    %c0_2 = arith.constant 0 : index
    %1 = vector.load %arg2[%c0_1, %c0_2] : memref<1x256xf32, #tpu.memory_space<vmem>>, vector<1x256xf32>
    %c0_3 = arith.constant 0 : index
    %c0_4 = arith.constant 0 : index
    %2 = vector.load %arg3[%c0_3, %c0_4] : memref<64x2xf32, #tpu.memory_space<vmem>>, vector<64x1xf32>
    %3 = vector.broadcast %2 : vector<64x1xf32> to vector<64x256xf32>
    %4 = vector.broadcast %0 : vector<1x256xf32> to vector<64x256xf32>
    %5 = arith.mulf %3, %4 : vector<64x256xf32>
    %c0_5 = arith.constant 0 : index
    %c1 = arith.constant 1 : index
    %6 = vector.load %arg3[%c0_5, %c1] : memref<64x2xf32, #tpu.memory_space<vmem>>, vector<64x1xf32>
    %7 = vector.broadcast %6 : vector<64x1xf32> to vector<64x256xf32>
    %8 = vector.broadcast %1 : vector<1x256xf32> to vector<64x256xf32>
    %9 = arith.mulf %7, %8 : vector<64x256xf32>
    %10 = arith.addf %5, %9 : vector<64x256xf32>
    %c0_6 = arith.constant 0 : index
    %c0_7 = arith.constant 0 : index
    %11 = vector.load %arg4[%c0_6, %c0_7] : memref<64x1xf32, #tpu.memory_space<vmem>>, vector<64x1xf32>
    %12 = vector.broadcast %11 : vector<64x1xf32> to vector<64x256xf32>
    %13 = arith.addf %10, %12 : vector<64x256xf32>
    %cst = arith.constant 0.000000e+00 : f32
    %14 = vector.broadcast %cst : f32 to vector<64x256xf32>
    %15 = arith.maximumf %13, %14 : vector<64x256xf32>
    %c0_8 = arith.constant 0 : index
    %c0_9 = arith.constant 0 : index
    %16 = vector.load %arg5[%c0_8, %c0_9] : memref<32x64xf32, #tpu.memory_space<vmem>>, vector<32x64xf32>
    %cst_10 = arith.constant dense<0.000000e+00> : vector<32x256xf32>
    %17 = tpu.matmul %16, %15, %cst_10 {dimension_numbers = #tpu.dot_dimension_numbers<[1], [0], [0], [1], [0, 0, 1, 1], [], []>} : vector<32x64xf32>, vector<64x256xf32>, vector<32x256xf32> -> vector<32x256xf32>
    %c0_11 = arith.constant 0 : index
    %c0_12 = arith.constant 0 : index
    %18 = vector.load %arg6[%c0_11, %c0_12] : memref<32x1xf32, #tpu.memory_space<vmem>>, vector<32x1xf32>
    %19 = vector.broadcast %18 : vector<32x1xf32> to vector<32x256xf32>
    %20 = arith.addf %17, %19 : vector<32x256xf32>
    %cst_13 = arith.constant 0.000000e+00 : f32
    %21 = vector.broadcast %cst_13 : f32 to vector<32x256xf32>
    %22 = arith.maximumf %20, %21 : vector<32x256xf32>
    %c0_14 = arith.constant 0 : index
    %c0_15 = arith.constant 0 : index
    %23 = vector.load %arg7[%c0_14, %c0_15] : memref<32x1xf32, #tpu.memory_space<vmem>>, vector<32x1xf32>
    %24 = vector.broadcast %23 : vector<32x1xf32> to vector<32x256xf32>
    %25 = arith.mulf %22, %24 : vector<32x256xf32>
    %cst_16 = arith.constant dense<0.000000e+00> : vector<256xf32>
    %26 = vector.multi_reduction <add>, %25, %cst_16 [0] : vector<32x256xf32> to vector<256xf32>
    %27 = vector.shape_cast %26 : vector<256xf32> to vector<1x256xf32>
    %c0_17 = arith.constant 0 : index
    %c0_18 = arith.constant 0 : index
    %28 = vector.load %arg8[%c0_17, %c0_18] : memref<1x1xf32, #tpu.memory_space<vmem>>, vector<1x1xf32>
    %29 = vector.broadcast %28 : vector<1x1xf32> to vector<1x256xf32>
    %30 = arith.addf %27, %29 : vector<1x256xf32>
    %c0_19 = arith.constant 0 : index
    %c0_20 = arith.constant 0 : index
    %31 = vector.load %arg9[%c0_19, %c0_20] : memref<1x256xf32, #tpu.memory_space<vmem>>, vector<1x256xf32>
    tpu.vector_store %arg9[%c0_19, %c0_20], %30 {strides = array<i32>} : memref<1x256xf32, #tpu.memory_space<vmem>>, vector<1x256xf32>,
    return
  }
  func.func @transform_0(%arg0: i32) -> (i32, i32) {
    %c0_i32 = arith.constant 0 : i32
    %c0_i32_0 = arith.constant 0 : i32
    return %c0_i32, %arg0 : i32, i32
  }
  func.func @transform_1(%arg0: i32) -> (i32, i32) {
    %c0_i32 = arith.constant 0 : i32
    %c0_i32_0 = arith.constant 0 : i32
    return %c0_i32, %arg0 : i32, i32
  }
  func.func @transform_2(%arg0: i32) -> (i32, i32) {
    %c0_i32 = arith.constant 0 : i32
    %c0_i32_0 = arith.constant 0 : i32
    %c0_i32_1 = arith.constant 0 : i32
    return %c0_i32, %c0_i32_0 : i32, i32
  }
  func.func @transform_3(%arg0: i32) -> (i32, i32) {
    %c0_i32 = arith.constant 0 : i32
    %c0_i32_0 = arith.constant 0 : i32
    %c0_i32_1 = arith.constant 0 : i32
    return %c0_i32, %c0_i32_0 : i32, i32
  }
  func.func @transform_4(%arg0: i32) -> (i32, i32) {
    %c0_i32 = arith.constant 0 : i32
    %c0_i32_0 = arith.constant 0 : i32
    %c0_i32_1 = arith.constant 0 : i32
    return %c0_i32, %c0_i32_0 : i32, i32
  }
  func.func @transform_5(%arg0: i32) -> (i32, i32) {
    %c0_i32 = arith.constant 0 : i32
    %c0_i32_0 = arith.constant 0 : i32
    %c0_i32_1 = arith.constant 0 : i32
    return %c0_i32, %c0_i32_0 : i32, i32
  }
  func.func @transform_6(%arg0: i32) -> (i32, i32) {
    %c0_i32 = arith.constant 0 : i32
    %c0_i32_0 = arith.constant 0 : i32
    %c0_i32_1 = arith.constant 0 : i32
    return %c0_i32, %c0_i32_0 : i32, i32
  }
  func.func @transform_7(%arg0: i32) -> (i32, i32) {
    %c0_i32 = arith.constant 0 : i32
    %c0_i32_0 = arith.constant 0 : i32
    %c0_i32_1 = arith.constant 0 : i32
    return %c0_i32, %c0_i32_0 : i32, i32
  }
  func.func @transform_8(%arg0: i32) -> (i32, i32) {
    %c0_i32 = arith.constant 0 : i32
    %c0_i32_0 = arith.constant 0 : i32
    return %c0_i32, %arg0 : i32, i32
  }
}

</mosaic_0001>

<bundles_post_ra>
// kernel: tpu_custom_call.1
= control target key start
LH: loop header
LB: loop body
LE: loop exit
PB: predicated region body
PF: predicated region fallthrough
CT: control target
= control target key end

     0   :  { %s1321_s0 = inlined_call_operand.vmem [shape: f32[1,512], index: 0, kind: input, shape index: {}]   ;;  %s1322_s1 = inlined_call_operand.vmem [shape: f32[1,512], index: 1, kind: input, shape index: {}]   ;;  %s1323_s2 = inlined_call_operand.vmem [shape: f32[64,2], index: 2, kind: input, shape index: {}]   ;;  %s1324_s3 = inlined_call_operand.vmem [shape: f32[64,1], index: 3, kind: input, shape index: {}]   ;;  %s1325_s4 = inlined_call_operand.vmem [shape: f32[32,64], index: 4, kind: input, shape index: {}]   ;;  %s1326_s5 = inlined_call_operand.vmem [shape: f32[32,1], index: 5, kind: input, shape index: {}]   ;;  %s1327_s6 = inlined_call_operand.vmem [shape: f32[32,1], index: 6, kind: input, shape index: {}]   ;;  %s1328_s7 = inlined_call_operand.<no memory space> [shape: f32[1,1], index: 7, kind: input, shape index: {}]   ;;  %s1329_s8 = inlined_call_operand.hbm [shape: f32[1,512], index: 8, kind: output, shape index: {}]  }
   0x1   :  { %v13_v0 = vstv %s1328_s7 }
   0x2   :  { %14 = vst [vmem:[#allocation2] sm:$0x1] %v13_v0 }
   0x3   :  { %15 = vsyncpa [#allocation4], 0 }
   0x4   :  { %17 = vsyncpa [#allocation4 + $0x1], 0  ;;  %s1071_s29 = smov 0   ;;  %s1073_s30 = smov 0  }
   0x5   :  { %s1075_s9 = smov 0   ;;  %s1077_s10 = smov 0  }
   0x6 LB: > { %s1092_s7 = sadd.s32 4294967295, %s1016_s10   ;;  %s860_s11 = sadd.s32 4294967294, %s1016_s10   ;;  %s1016_s10 = sphi %s1077_s10, %s1335_s10   ;;  %s1012_s9 = sphi %s1075_s9, %s1334_s9   ;;  %s1008_s30 = sphi %s1073_s30, %s1333_s30   ;;  %s1004_s29 = sphi %s1071_s29, %s1332_s29  }
   0x7   : > { %s1096_s12 = sadd.s32 1, %s1016_s10   ;;  %s208_s13 = sadd.s32 1, %s1012_s9 }
   0x8   : > { %s205_s14 = ssub.s32 %s1016_s10, %s1096_s12  ;;  %p218_p0 = scmp.ne.s32.totalorder %s1012_s9, %s1008_s30 }
   0x9   : > { %p206_p1 = scmp.eq.s32.totalorder %s205_s14, 0  ;;  %p219_p2 = scmp.eq.s32.totalorder %s1092_s7, 1 }
   0xa   : > { %p224_p3 = scmp.ne.s32.totalorder %s1008_s30, %s1004_s29  ;;  %p225_p4 = scmp.eq.s32.totalorder %s860_s11, 1 }
   0xb   : > { %s1107_s15 = scalar_select %p206_p1, %s1012_s9, %s208_s13  }
   0xc   : > { %p1109_p5 = por %p219_p2, %p218_p0  ;;  %p1113_p6 = por %p225_p4, %p224_p3 }
   0xd   : > { %p863_p7 = scmp.ge.s32.totalorder %s1016_s10, 1  ;;  %p277_p8 = scmp.lt.s32.totalorder %s1016_s10, 3 }
   0xf   : > { %p278_p9 = pnand %p863_p7, %p277_p8 }
  0x10   : > { %v329_v1 = vld [vmem:[%s1323_s2 + $0x10] sm:$0xff] (!%p278_p9)  ;;  %v327_v2 = vld [vmem:[%s1323_s2] sm:$0xff] (!%p278_p9)  ;;  %v1018_v3 = vmov (!%p278_p9), 1   ;;  %v328_v5 = vld [vmem:[%s1323_s2 + $0x8] sm:$0xff] (!%p278_p9)  ;;  %v1019_v8 = vmov (!%p278_p9), 0   ;;  %v1020_v26 = vmov (!%p278_p9), 0.0   ;;  %v376_v31 = vlaneseq (!%p278_p9) }
  0x11   : > { %281 = sbr.rel (%p278_p9) target bundleno = 482 (0x1e2), region = 52  ;;  %946 = vset.pattern.permute.xlu0 (!%p278_p9), %v1018_v3  ;;  %944 = vset.pattern.permute.xlu1 (!%p278_p9), %v1018_v3  ;;  %v331_v4 = vld [vmem:[%s1323_s2 + $0x20] sm:$0xff] (!%p278_p9)  ;;  %v333_v6 = vld [vmem:[%s1323_s2 + $0x30] sm:$0xff] (!%p278_p9)  ;;  %v330_v7 = vld [vmem:[%s1323_s2 + $0x18] sm:$0xff] (!%p278_p9)  ;;  %s865_s24 = sshll.u32 (!%p278_p9), %s1092_s7, 1  ;;  %vm585_vm0 = vcmask (!%p278_p9), 523264  }
  0x12   : > { %411 = vperm.xlu0 (!%p278_p9), %946, %v329_v1   ;;  %403 = vperm.xlu1 (!%p278_p9), %944, %v327_v2   ;;  %v477_v9 = vld [vmem:[%s1324_s3] sm:$0xff] (!%p278_p9)  ;;  %v478_v10 = vld [vmem:[%s1324_s3 + $0x8] sm:$0xff] (!%p278_p9)  ;;  %v480_v12 = vld [vmem:[%s1324_s3 + $0x18] sm:$0xff] (!%p278_p9)  ;;  %p315_p10 = scmp.lt.s32.totalorder (!%p278_p9), %s865_s24, 3  ;;  %v1197_v34 = vshrl.u32 (!%p278_p9), %v376_v31, 7  ;;  %s311_s25 = sand.u32 (!%p278_p9), 1, %s1008_s30  }
  0x13   : > { %v332_v11 = vld [vmem:[%s1323_s2 + $0x28] sm:$0xff] (!%p278_p9)  ;;  %v561_v14 = vld [vmem:[%s1326_s5] sm:$0xff] (!%p278_p9)  ;;  %v479_v15 = vld [vmem:[%s1324_s3 + $0x10] sm:$0xff] (!%p278_p9)  ;;  %662 = vmatprep.mubr.f32.mxu0 (!%p278_p9), %v1020_v26  ;;  %674 = vmatprep.mubr.f32.mxu1 (!%p278_p9), %v1020_v26  ;;  %s864_s26 = sshll.u32 (!%p278_p9), %s311_s25, 1  ;;  %vm777_vm1 = vcmp.lt.s32.totalorder (!%p278_p9), %v376_v31, 256  ;;  %s781_s19 = scalar_lea.sflag (!%p278_p9), [#allocation4], %s311_s25 }
  0x14   : > { %v482_v13 = vld [vmem:[%s1324_s3 + $0x28] sm:$0xff] (!%p278_p9)  ;;  %v563_v16 = vld [vmem:[%s1326_s5 + $0x10] sm:$0xff] (!%p278_p9)  ;;  %v695_v17 = vld [vmem:[%s1327_s6] sm:$0xff] (!%p278_p9)  ;;  %v1208_v37 = vsub.s32 (!%p278_p9), 0, %v1197_v34  ;;  %v382_v38 = vsub.s32 (!%p278_p9), 1, %v1197_v34  ;;  %s313_s28 = scalar_lea.vmem (!%p278_p9), [#allocation3], %s864_s26 }
  0x15   : > { %v334_v18 = vld [vmem:[%s1323_s2 + $0x38] sm:$0xff] (!%p278_p9)  ;;  %v697_v19 = vld [vmem:[%s1327_s6 + $0x10] sm:$0xff] (!%p278_p9)  ;;  %v745_v20 = vld [vmem:[#allocation2] sm:$0x1] (!%p278_p9)  ;;  %s795_s11 = sshll.u32 (!%p278_p9), %s313_s28, 4  ;;  %s1281_s11 = int_to_ptr.vmem [resolvable:$true] %s795_s11 }
  0x16   : > { %419 = vperm.xlu0 (!%p278_p9), %946, %v331_v4   ;;  %407 = vperm.xlu1 (!%p278_p9), %944, %v328_v5   ;;  %v481_v21 = vld [vmem:[%s1324_s3 + $0x20] sm:$0xff] (!%p278_p9)  ;;  %v483_v22 = vld [vmem:[%s1324_s3 + $0x30] sm:$0xff] (!%p278_p9)  ;;  %v484_v23 = vld [vmem:[%s1324_s3 + $0x38] sm:$0xff] (!%p278_p9)  ;;  %s954_s20 = scalar_lea.vmem (!%p278_p9), %s1281_s11, 32 }
  0x17   : > { %v562_v24 = vld [vmem:[%s1326_s5 + $0x8] sm:$0xff] (!%p278_p9)  ;;  %v564_v25 = vld [vmem:[%s1326_s5 + $0x18] sm:$0xff] (!%p278_p9)  ;;  %p955_p11 = scmp.ne.s32.totalorder (!%p278_p9), %s1281_s11, %s954_s20 }
  0x18   : > { %v696_v27 = vld [vmem:[%s1327_s6 + $0x8] sm:$0xff]  ;;  %v698_v28 = vld [vmem:[%s1327_s6 + $0x18] sm:$0xff]  ;;  %s1337_s24 = smov (!%p315_p10, %s865_s24), 3 }
  0x19   : > { %s322_s27 = scalar_lea.vmem %s1322_s1, %s1337_s24  ;;  %s317_s13 = scalar_lea.vmem %s1321_s0, %s1337_s24 }
  0x1a   : > { %427 = vperm.xlu0 %946, %v333_v6   ;;  %945 = vset.pattern.permute.xlu1 %v1019_v8  ;;  %v326_v39 = vld [vmem:[%s322_s27] sm:$0x3]  ;;  %s876_s27 = sshll.u32 %s1092_s7, 5  ;;  %p956_p12 = pnand %p955_p11, %p1109_p5 }
  0x1b   : > { %352 = vperm.xlu1 %945, %v330_v7   ;;  %v325_v40 = vld [vmem:[%s317_s13] sm:$0x3]  ;;  %v1212_v43 = vrot.slane %v326_v39, %v1208_v37  ;;  %v1214_v44 = vrot.slane %v326_v39, %v382_v38  ;;  %s1279_s18 = scalar_lea.hbm %s1329_s8, %s876_s27  ;;  %s1022_s7 = smov [#allocation3]  }
  0x1c   : > { %v1217_v45 = vrot.slane %v325_v40, %v1208_v37  ;;  %v1219_v46 = vrot.slane %v325_v40, %v382_v38  ;;  %p957_p13 = pneg %p956_p12  ;;  %s958_s21 = sshll.u32 %s1022_s7, 4  ;;  %s959_s21 = int_to_ptr.vmem [resolvable:$false] %s958_s21 }
  0x1d   : > { %s960_s22 = scalar_lea.vmem %s959_s21, 64  ;;  %p961_p0 = scmp.lt.s32.totalorder %s1281_s11, %s959_s21 }
  0x1e   : > { %951 = vset.pattern.permute.xlu0 %v1019_v8  ;;  %p962_p1 = scmp.lt.s32.totalorder %s960_s22, %s954_s20 }
  0x1f   : > { %337 = vperm.xlu0 %951, %v327_v2   ;;  %947 = vset.pattern.permute.xlu1 %v1018_v3 }
  0x20   : > { %415 = vperm.xlu1 %947, %v330_v7   ;;  %p963_p2 = por %p962_p1, %p961_p0 }
  0x22   : > { %p964_p3 = pnand %p963_p2, %p957_p13 }
  0x23   : > { %342 = vperm.xlu0 %951, %v328_v5  }
  0x24   : > { %948 = vset.pattern.permute.xlu1 %v1019_v8 }
  0x25   : > { %487 = vperm.xlu1 %948, %v477_v9  }
  0x27   : > { %347 = vperm.xlu0 %951, %v329_v1  }
  0x29   : > { %357 = vperm.xlu1 %948, %v331_v4  }
  0x2b   : > { %492 = vperm.xlu0 %951, %v478_v10  }
  0x2d   : > { %362 = vperm.xlu1 %948, %v332_v11  }
  0x2f   : > { %502 = vperm.xlu0 %951, %v480_v12  }
  0x31   : > { %949 = vset.pattern.permute.xlu1 %v1018_v3 }
  0x32   : > { %423 = vperm.xlu1 %949, %v332_v11  }
  0x33   : > { %512 = vperm.xlu0 %951, %v482_v13  }
  0x36   : > { %950 = vset.pattern.permute.xlu1 %v1019_v8 }
  0x37   : > { %567 = vperm.xlu0 %951, %v561_v14   ;;  %497 = vperm.xlu1 %950, %v479_v15  }
  0x3b   : > { %577 = vperm.xlu0 %951, %v563_v16   ;;  %367 = vperm.xlu1 %950, %v333_v6  }
  0x3f   : > { %701 = vperm.xlu0 %951, %v695_v17   ;;  %372 = vperm.xlu1 %950, %v334_v18  }
  0x43   : > { %711 = vperm.xlu0 %951, %v697_v19   ;;  %952 = vset.pattern.permute.xlu1 %v1018_v3 }
  0x44   : > { %431 = vperm.xlu1 %952, %v334_v18  }
  0x47   : > { %748 = vperm.xlu0 %951, %v745_v20  }
  0x48   : > { %953 = vset.pattern.permute.xlu1 %v1019_v8 }
  0x49   : > { %507 = vperm.xlu1 %953, %v481_v21  }
  0x4d   : > { %517 = vperm.xlu1 %953, %v483_v22  }
  0x51   : > { %522 = vperm.xlu1 %953, %v484_v23  }
  0x55   : > { %572 = vperm.xlu1 %953, %v562_v24  }
  0x59   : > { %582 = vperm.xlu1 %953, %v564_v25  }
  0x5d   : > { %706 = vperm.xlu1 %953, %v696_v27  }
  0x61   : > { %716 = vperm.xlu1 %953, %v698_v28  }
  0x91   : > { %v404_v29 = vpop.permute.xlu1 %403  ;;  %v412_v30 = vpop.permute.xlu0 %411 }
  0x92   : > { %v445_v51 = vmul.f32 %v1212_v43, %v404_v29  ;;  %v446_v52 = vmul.f32 %v1214_v44, %v404_v29  ;;  %v449_v13 = vmul.f32 %v1212_v43, %v412_v30  ;;  %v450_v14 = vmul.f32 %v1214_v44, %v412_v30 }
  0x95   : > { %v408_v32 = vpop.permute.xlu1 %407  ;;  %v1194_v33 = vpop.permute.xlu0 %419 }
  0x96   : > { %v447_v56 = vmul.f32 %v1212_v43, %v408_v32  ;;  %v448_v57 = vmul.f32 %v1214_v44, %v408_v32 }
  0x99   : > { %v1199_v35 = vpop.permute.xlu0 %427 }
  0x9a   : > { %v353_v36 = vpop.permute.xlu1 %352 }
  0x9b   : > { %v392_v15 = vmul.f32 %v1217_v45, %v353_v36  ;;  %v393_v16 = vmul.f32 %v1219_v46, %v353_v36 }
  0x9e   : > { %v338_v41 = vpop.permute.xlu0 %337 }
  0x9f   : > { %v416_v42 = vpop.permute.xlu1 %415  ;;  %v386_v48 = vmul.f32 %v1217_v45, %v338_v41  ;;  %v387_v49 = vmul.f32 %v1219_v46, %v338_v41 }
  0xa0   : > { %v451_v9 = vmul.f32 %v1212_v43, %v416_v42  ;;  %v452_v10 = vmul.f32 %v1214_v44, %v416_v42 }
  0xa1   : > { %v461_v58 = vadd.f32 %v445_v51, %v386_v48  ;;  %v462_v59 = vadd.f32 %v446_v52, %v387_v49  ;;  %v453_v52 = vmul.f32 %v1212_v43, %v1194_v33 }
  0xa2   : > { %v343_v47 = vpop.permute.xlu0 %342  ;;  %v467_v21 = vadd.f32 %v451_v9, %v392_v15  ;;  %v468_v22 = vadd.f32 %v452_v10, %v393_v16 }
  0xa3   : > { %v388_v53 = vmul.f32 %v1217_v45, %v343_v47  ;;  %v389_v54 = vmul.f32 %v1219_v46, %v343_v47 }
  0xa4   : > { %v488_v50 = vpop.permute.xlu1 %487 }
  0xa5   : > { %v525_v61 = vadd.f32 %v488_v50, %v461_v58  ;;  %v526_v62 = vadd.f32 %v488_v50, %v462_v59  ;;  %v463_v63 = vadd.f32 %v447_v56, %v388_v53  ;;  %v464_v0 = vadd.f32 %v448_v57, %v389_v54 }
  0xa6   : > { %v348_v55 = vpop.permute.xlu0 %347  ;;  %v454_v54 = vmul.f32 %v1214_v44, %v1194_v33  ;;  %v457_v33 = vmul.f32 %v1212_v43, %v1199_v35 }
  0xa7   : > { %v541_v5 = vmax.f32 %v525_v61, 0.0  ;;  %v542_v6 = vmax.f32 %v526_v62, 0.0  ;;  %v390_v17 = vmul.f32 %v1217_v45, %v348_v55  ;;  %v391_v18 = vmul.f32 %v1219_v46, %v348_v55 }
  0xa8   : > { %v358_v60 = vpop.permute.xlu1 %357 }
  0xa9   : > { %v465_v25 = vadd.f32 %v449_v13, %v390_v17  ;;  %v466_v27 = vadd.f32 %v450_v14, %v391_v18  ;;  %v394_v55 = vmul.f32 %v1217_v45, %v358_v60  ;;  %v395_v56 = vmul.f32 %v1219_v46, %v358_v60 }
  0xaa   : > { %v493_v1 = vpop.permute.xlu0 %492  ;;  %v458_v60 = vmul.f32 %v1214_v44, %v1199_v35 }
  0xab   : > { %v527_v2 = vadd.f32 %v493_v1, %v463_v63  ;;  %v528_v3 = vadd.f32 %v493_v1, %v464_v0  ;;  %v469_v63 = vadd.f32 %v453_v52, %v394_v55  ;;  %v470_v0 = vadd.f32 %v454_v54, %v395_v56 }
  0xac   : > { %v363_v4 = vpop.permute.xlu1 %362 }
  0xad   : > { %v543_v7 = vmax.f32 %v527_v2, 0.0  ;;  %v544_v8 = vmax.f32 %v528_v3, 0.0  ;;  %v396_v50 = vmul.f32 %v1217_v45, %v363_v4  ;;  %v397_v51 = vmul.f32 %v1219_v46, %v363_v4 }
  0xae   : > { %v503_v20 = vpop.permute.xlu0 %502 }
  0xaf   : > { %v877_v11 = vpack.c.bf16 %v544_v8, %v542_v6  ;;  %v879_v12 = vpack.c.bf16 %v543_v7, %v541_v5  ;;  %v531_v23 = vadd.f32 %v503_v20, %v467_v21  ;;  %v532_v24 = vadd.f32 %v503_v20, %v468_v22 }
  0xb1   : > { %v424_v19 = vpop.permute.xlu1 %423  ;;  %878 = vmatprep.subr.bf16.mxu0 %v877_v11  ;;  %893 = vmatprep.subr.bf16.mxu1 %v877_v11  ;;  %v547_v32 = vmax.f32 %v531_v23, 0.0  ;;  %v548_v36 = vmax.f32 %v532_v24, 0.0 }
  0xb2   : > { %880 = vmatpush1.bf16.msra.mxu0 %v879_v12  ;;  %897 = vmatpush1.bf16.msra.mxu1 %v879_v12  ;;  %v455_v47 = vmul.f32 %v1212_v43, %v424_v19  ;;  %v456_v49 = vmul.f32 %v1214_v44, %v424_v19  ;;  %v513_v59 = vpop.permute.xlu0 %512 }
  0xb4   : > { %v471_v53 = vadd.f32 %v455_v47, %v396_v50  ;;  %v472_v57 = vadd.f32 %v456_v49, %v397_v51 }
  0xb6   : > { %v498_v28 = vpop.permute.xlu1 %497  ;;  %v535_v61 = vadd.f32 %v513_v59, %v471_v53  ;;  %v536_v62 = vadd.f32 %v513_v59, %v472_v57 }
  0xb7   : > { %v529_v29 = vadd.f32 %v498_v28, %v465_v25  ;;  %v530_v30 = vadd.f32 %v498_v28, %v466_v27  ;;  %v557_v28 = vld [vmem:[%s1325_s4] sm:$0xff] }
  0xb8   : > { %v551_v6 = vmax.f32 %v535_v61, 0.0  ;;  %v552_v8 = vmax.f32 %v536_v62, 0.0 }
  0xb9   : > { %v545_v38 = vmax.f32 %v529_v29, 0.0  ;;  %v546_v39 = vmax.f32 %v530_v30, 0.0  ;;  %v559_v29 = vld [vmem:[%s1325_s4 + $0x10] sm:$0xff]  ;;  %v558_v30 = vld [vmem:[%s1325_s4 + $0x8] sm:$0xff] }
  0xba   : > { %v368_v40 = vpop.permute.xlu1 %367 }
  0xbb   : > { %v881_v41 = vpack.c.bf16 %v548_v36, %v546_v39  ;;  %v883_v42 = vpack.c.bf16 %v547_v32, %v545_v38  ;;  %v398_v1 = vmul.f32 %v1217_v45, %v368_v40  ;;  %v399_v3 = vmul.f32 %v1219_v46, %v368_v40  ;;  %v560_v32 = vld [vmem:[%s1325_s4 + $0x18] sm:$0xff]  ;;  %v568_v36 = vpop.permute.xlu0 %567 }
  0xbd   : > { %882 = vmatprep.subr.bf16.mxu0 %v881_v41  ;;  %894 = vmatprep.subr.bf16.mxu1 %v881_v41  ;;  %v473_v14 = vadd.f32 %v457_v33, %v398_v1  ;;  %v474_v16 = vadd.f32 %v458_v60, %v399_v3 }
  0xbe   : > { %v373_v48 = vpop.permute.xlu1 %372  ;;  %884 = vmatpush1.bf16.msra.mxu0 %v883_v42  ;;  %898 = vmatpush1.bf16.msra.mxu1 %v883_v42 }
  0xbf   : > { %v400_v12 = vmul.f32 %v1217_v45, %v373_v48  ;;  %v401_v15 = vmul.f32 %v1219_v46, %v373_v48  ;;  %v578_v39 = vpop.permute.xlu0 %577 }
  0xc3   : > { %v432_v58 = vpop.permute.xlu1 %431  ;;  %v702_v50 = vpop.permute.xlu0 %701 }
  0xc4   : > { %v459_v7 = vmul.f32 %v1212_v43, %v432_v58  ;;  %v460_v9 = vmul.f32 %v1214_v44, %v432_v58 }
  0xc6   : > { %v475_v19 = vadd.f32 %v459_v7, %v400_v12  ;;  %v476_v43 = vadd.f32 %v460_v9, %v401_v15 }
  0xc8   : > { %v508_v2 = vpop.permute.xlu1 %507 }
  0xc9   : > { %v533_v4 = vadd.f32 %v508_v2, %v469_v63  ;;  %v534_v5 = vadd.f32 %v508_v2, %v470_v0 }
  0xcb   : > { %v549_v10 = vmax.f32 %v533_v4, 0.0  ;;  %v550_v11 = vmax.f32 %v534_v5, 0.0 }
  0xcc   : > { %v518_v13 = vpop.permute.xlu1 %517 }
  0xcd   : > { %v885_v17 = vpack.c.bf16 %v552_v8, %v550_v11  ;;  %v887_v18 = vpack.c.bf16 %v551_v6, %v549_v10  ;;  %v537_v20 = vadd.f32 %v518_v13, %v473_v14  ;;  %v538_v35 = vadd.f32 %v518_v13, %v474_v16  ;;  %v712_v6 = vpop.permute.xlu0 %711 }
  0xcf   : > { %886 = vmatprep.subr.bf16.mxu0 %v885_v17  ;;  %895 = vmatprep.subr.bf16.mxu1 %v885_v17  ;;  %v553_v23 = vmax.f32 %v537_v20, 0.0  ;;  %v554_v45 = vmax.f32 %v538_v35, 0.0 }
  0xd0   : > { %v523_v21 = vpop.permute.xlu1 %522  ;;  %888 = vmatpush1.bf16.msra.mxu0 %v887_v18  ;;  %899 = vmatpush1.bf16.msra.mxu1 %v887_v18 }
  0xd1   : > { %v539_v44 = vadd.f32 %v523_v21, %v475_v19  ;;  %v540_v22 = vadd.f32 %v523_v21, %v476_v43 }
  0xd3   : > { %v555_v24 = vmax.f32 %v539_v44, 0.0  ;;  %v556_v25 = vmax.f32 %v540_v22, 0.0 }
  0xd4   : > { %v573_v38 = vpop.permute.xlu1 %572 }
  0xd5   : > { %v889_v27 = vpack.c.bf16 %v556_v25, %v554_v45  ;;  %v891_v46 = vpack.c.bf16 %v555_v24, %v553_v23  ;;  %v1021_v45 = vmov 1966171168  }
  0xd6   : > { %v761_v24 = vunpack.c.l.s4 %v1021_v45 }
  0xd7   : > { %890 = vmatprep.subr.bf16.mxu0 %v889_v27  ;;  %896 = vmatprep.subr.bf16.mxu1 %v889_v27  ;;  %v749_v27 = vpop.permute.xlu0 %748 }
  0xd8   : > { %892 = vmatpush1.bf16.msra.mxu0 %v891_v46  ;;  %900 = vmatpush1.bf16.msra.mxu1 %v891_v46  ;;  %v583_v40 = vpop.permute.xlu1 %582 }
  0xdb   : > { %867 = vmatmul.mubr.msk.f32.vlgmr.msra.gmra.mrb[0].mxu0 %vm585_vm0, %v557_v28  ;;  %869 = vmatmul.mubr.msk.f32.vlgmr.msra.gmra.mrb[0].mxu1 %vm585_vm0, %v559_v29 }
  0xdc   : > { %668 = vmatprep.mubr.f32.mxu0 %v1020_v26  ;;  %680 = vmatprep.mubr.f32.mxu1 %v1020_v26  ;;  %v707_v61 = vpop.permute.xlu1 %706 }
  0xdf   : > { %868 = vmatmul.mubr.msk.f32.gmra.mrb[2].mxu0 %vm585_vm0, %v558_v30  ;;  %870 = vmatmul.mubr.msk.f32.gmra.mrb[2].mxu1 %vm585_vm0, %v560_v32  ;;  %v762_v30 = vunpack.c.0.s8 %v761_v24  ;;  %v754_v32 = vrot.slane %v749_v27, %v1208_v37 }
  0xe0   : > { %v717_v12 = vpop.permute.xlu1 %716 }
 0x1ae   : > { %v664_v41 = vpop.f32.mrb[0].mxu0  ;;  %v676_v42 = vpop.f32.mrb[0].mxu1 }
 0x1af   : > { %v665_v47 = vadd.f32 %v664_v41, %v568_v36  ;;  %v666_v48 = vpop.f32.mrb[1].mxu0  ;;  %v678_v49 = vpop.f32.mrb[1].mxu1  ;;  %v677_v51 = vadd.f32 %v676_v42, %v578_v39  ;;  %v765_v41 = vsub.s32 %v762_v30, %v1197_v34 }
 0x1b0   : > { %v667_v26 = vadd.f32 %v666_v48, %v568_v36  ;;  %v679_v52 = vadd.f32 %v678_v49, %v578_v39 }
 0x1b1   : > { %v687_v55 = vmax.f32 %v665_v47, 0.0  ;;  %v691_v1 = vmax.f32 %v677_v51, 0.0 }
 0x1b2   : > { %v670_v53 = vpop.f32.mrb[2].mxu0  ;;  %v682_v54 = vpop.f32.mrb[2].mxu1  ;;  %v688_v62 = vmax.f32 %v667_v26, 0.0  ;;  %v692_v3 = vmax.f32 %v679_v52, 0.0 }
 0x1b3   : > { %v671_v56 = vadd.f32 %v670_v53, %v573_v38  ;;  %v683_v57 = vadd.f32 %v682_v54, %v583_v40  ;;  %v672_v58 = vpop.f32.mrb[3].mxu0  ;;  %v684_v59 = vpop.f32.mrb[3].mxu1  ;;  %v719_v5 = vmul.f32 %v702_v50, %v687_v55  ;;  %v723_v10 = vmul.f32 %v712_v6, %v691_v1 }
 0x1b4   : > { %v673_v63 = vadd.f32 %v672_v58, %v573_v38  ;;  %v685_v0 = vadd.f32 %v684_v59, %v583_v40  ;;  %v720_v7 = vmul.f32 %v702_v50, %v688_v62  ;;  %v724_v13 = vmul.f32 %v712_v6, %v692_v3 }
 0x1b5   : > { %v689_v2 = vmax.f32 %v671_v56, 0.0  ;;  %v693_v60 = vmax.f32 %v683_v57, 0.0 }
 0x1b6   : > { %v690_v4 = vmax.f32 %v673_v63, 0.0  ;;  %v694_v9 = vmax.f32 %v685_v0, 0.0 }
 0x1b7   : > { %v721_v33 = vmul.f32 %v707_v61, %v689_v2  ;;  %v725_v15 = vmul.f32 %v717_v12, %v693_v60 }
 0x1b8   : > { %v722_v8 = vmul.f32 %v707_v61, %v690_v4  ;;  %v726_v17 = vmul.f32 %v717_v12, %v694_v9 }
 0x1b9   : > { %v727_v11 = vadd.f32 %v721_v33, %v719_v5 }
 0x1ba   : > { %v736_v14 = vadd.f32 %v722_v8, %v720_v7 }
 0x1bb   : > { %v728_v16 = vadd.f32 %v727_v11, %v723_v10 }
 0x1bc   : > { %v737_v18 = vadd.f32 %v736_v14, %v724_v13 }
 0x1bd   : > { %v729_v19 = vadd.f32 %v728_v16, %v725_v15 }
 0x1be   : > { %v738_v20 = vadd.f32 %v737_v18, %v726_v17 }
 0x1bf   : > { %v730_v35 = vrot.slane %v729_v19, 4 }
 0x1c0   : > { %v739_v43 = vrot.slane %v738_v20, 4 }
 0x1c1   : > { %v731_v21 = vadd.f32 %v730_v35, %v729_v19 }
 0x1c2   : > { %v740_v44 = vadd.f32 %v739_v43, %v738_v20 }
 0x1c3   : > { %v732_v22 = vrot.slane %v731_v21, 2 }
 0x1c4   : > { %v741_v23 = vrot.slane %v740_v44, 2 }
 0x1c5   : > { %v733_v25 = vadd.f32 %v732_v22, %v731_v21 }
 0x1c6   : > { %v742_v46 = vadd.f32 %v741_v23, %v740_v44 }
 0x1c7   : > { %v734_v28 = vrot.slane %v733_v25, 1 }
 0x1c8   : > { %v743_v29 = vrot.slane %v742_v46, 1 }
 0x1c9   : > { %v735_v36 = vadd.f32 %v734_v28, %v733_v25 }
 0x1ca   : > { %v744_v38 = vadd.f32 %v743_v29, %v742_v46 }
 0x1cb   : > { %v755_v39 = vadd.f32 %v754_v32, %v735_v36 }
 0x1cc   : > { %v756_v40 = vadd.f32 %v754_v32, %v744_v38 }
 0x1ce   : > { %v759_v42 = vcombine.low %v755_v39, %v756_v40 }
 0x1d0   : > { %v766_v47 = vrot.slane %v759_v42, %v765_v41 }
 0x1d2   : > { %v773_v48 = vrot.slane %v766_v47, %v765_v41 }
 0x1d4   : > { %779 = vst.msk [vmem:[%s313_s28] sm:$0x3] %vm777_vm1, %v773_v48 }
 0x1d5   : > { %967 = shalt.err (!%p964_p3)
}
 0x1d6   : > { %s968_s23 = scalar_lea.hbm %s1279_s18, 32  ;;  %s972_s26 = scalar_lea.hbm %s1329_s8, 64 }
 0x1d7   : > { %p969_p4 = scmp.ne.s32.totalorder %s1279_s18, %s968_s23  ;;  %p973_p9 = scmp.lt.u32.totalorder %s1279_s18, %s1329_s8 }
 0x1d8   : > { %p974_p10 = scmp.lt.u32.totalorder %s972_s26, %s968_s23  ;;  %p976_p12 = scmp.lt.u32.totalorder %s968_s23, %s1279_s18 }
 0x1d9   : > { %p970_p7 = pnand %p969_p4, %p1109_p5 }
 0x1da   : > { %p975_p11 = por %p974_p10, %p973_p9 }
 0x1db   : > { %p971_p8 = pneg %p970_p7 }
 0x1dc   : > { %p977_p13 = por %p976_p12, %p975_p11 }
 0x1de   : > { %p978_p0 = pnand %p977_p13, %p971_p8 }
 0x1e0   : > { %981 = shalt.err (!%p978_p0)
}
 0x1e1   : > { %901 = dma.vmem_to_hbm [thread:$0]  (%p1109_p5), %s1281_s11, 32, %s1279_s18, %s781_s19  }
 0x1e2 PF: > { %p907_p1 = scmp.ge.s32.totalorder %s1016_s10, 2  ;;  %s807_s13 = sand.u32 1, %s1004_s29  }
 0x1e3   : > { %s808_s14 = scalar_lea.sflag [#allocation4], %s807_s13 }
 0x1e4   : > { %p904_p2 = pnand %p907_p1, %p1113_p6 }
 0x1e6   : > { %999 = dma.done.wait (!%p904_p2), %s808_s14, 32  }
 0x1e7   : > { %1001 = vsyncadd (!%p904_p2), %s808_s14, 4294967264  ;;  %p20_p3 = scmp.ge.s32.totalorder %s1096_s12, 4   ;;  %s1332_s29 = smov %s1008_s30 }
 0x1e8   : > { %s1333_s30 = smov %s1012_s9  ;;  %s1334_s9 = smov %s1107_s15 }
 0x1e9   : > { %s1335_s10 = smov %s1096_s12  ;;  %22 = sbr.rel (!%p20_p3) target bundleno = 6 (0x6), region = 90 }
 0x1f0   :  { %813 = vsyncpa [#allocation4], 1 }
 0x1f1   :  { %815 = vsyncpa [#allocation4 + $0x1], 1 }

</bundles_post_ra>
